<compile_context>
chip_gen: v7x
topology: tpu7x:2x2x1
jax: 0.10.0
libtpu: 0.0.40
codegen_flags: <defaults>
</compile_context>

<pallas_src>
import functools

import jax
import jax.numpy as jnp
from jax import lax
from jax.experimental import pallas as pl
from jax.experimental.pallas import tpu as pltpu


def _self_attention_kernel(x_ref, wq_ref, wk_ref, wv_ref, wo_ref, b_ref,
                           o_ref, k_sc, v_sc, ctx_sc, *, num_heads, n_valid):
    """One (batch, query-tile) grid step.

    x_ref   : (1, Np, D) full (padded) sequence of this batch element (f32)
    wq_ref  : (D, D) bf16, softmax scale pre-folded
    wk_ref  : (D, D) bf16
    wv_ref  : (D, D) bf16
    wo_ref  : (D, D) bf16
    b_ref   : (1, D)  f32
    o_ref   : (1, TQ, D)
    k_sc    : (Np, D) bf16 scratch -- K for all heads, lane-concatenated
    v_sc    : (Np, D) bf16 scratch -- V for all heads, lane-concatenated
    ctx_sc  : (TQ, D) bf16 scratch -- per-head contexts, lane-concatenated
    """
    n_pad, d = k_sc.shape
    tq = o_ref.shape[1]
    hd = d // num_heads

    # --- K/V projection: full-width (Np, D) @ (D, D) GEMMs (full MXU fill),
    # done once per batch element (first query tile) and cached in VMEM
    # scratch across the sequential "arbitrary" query-tile axis.
    @pl.when(pl.program_id(1) == 0)
    def _():
        x_all = x_ref[0].astype(jnp.bfloat16)                        # (Np, D)
        k_sc[...] = jnp.dot(x_all, wk_ref[...],
                            preferred_element_type=jnp.float32
                            ).astype(jnp.bfloat16)
        v_sc[...] = jnp.dot(x_all, wv_ref[...],
                            preferred_element_type=jnp.float32
                            ).astype(jnp.bfloat16)

    # --- Q projection for this tile: slice the query rows out of the already
    # resident x block (no second HBM stream of x); full-width GEMM.
    start = pl.multiple_of(pl.program_id(1) * tq, tq)
    xq = x_ref[0, pl.ds(start, tq), :].astype(jnp.bfloat16)          # (TQ, D)
    q = jnp.dot(xq, wq_ref[...],
                preferred_element_type=jnp.float32).astype(jnp.bfloat16)

    # q @ k^T: contract last dims of both operands (no materialized K^T).
    qk_dims = (((1,), (1,)), ((), ()))

    # --- Per-head attention.  Head slices are *static* lane slices of the
    # fused (.., D) tensors / scratch (free of per-head weight relayouts).
    # TODO(synk): for num_heads >= 8 make heads a grid axis (or fori_loop over
    # an (H, N, hd) scratch) to bound live ranges of the (TQ, N) temporaries.
    for h in range(num_heads):
        sl = slice(h * hd, (h + 1) * hd)
        qh = q[:, sl]                                                # (TQ, hd)
        kh = k_sc[:, sl]                                             # (Np, hd)
        vh = v_sc[:, sl]                                             # (Np, hd)

        logits = lax.dot_general(qh, kh, qk_dims,
                                 preferred_element_type=jnp.float32)  # (TQ, Np)
        if n_valid < n_pad:       # static: only traced when N was padded
            col = lax.broadcasted_iota(jnp.int32, logits.shape, 1)
            logits = jnp.where(col < n_valid, logits, -1e30)

        m = jnp.max(logits, axis=-1, keepdims=True)
        p = jnp.exp(logits - m)                                      # (TQ, Np)
        denom = jnp.sum(p, axis=-1, keepdims=True)                   # (TQ, 1)

        ctx = jnp.dot(p.astype(jnp.bfloat16), vh,
                      preferred_element_type=jnp.float32)            # (TQ, hd)
        # Deferred softmax normalization: scale the (TQ, hd) context rather
        # than the (TQ, Np) probabilities (EUP reciprocal, far fewer VALU muls).
        ctx = ctx * pl.reciprocal(denom, approx=True)
        ctx_sc[:, sl] = ctx.astype(jnp.bfloat16)

    # --- Output projection: full-width (TQ, D) @ (D, D) GEMM, + bias.
    # dropout_p = 0.0 -> identity (skipped).
    out = jnp.dot(ctx_sc[...], wo_ref[...],
                  preferred_element_type=jnp.float32)
    o_ref[0] = (out + b_ref[...]).astype(o_ref.dtype)


def _vmem_limit_bytes():
    """Per-generation scoped-VMEM limit: ~3/4 of physical VMEM (≈96 MiB on
    v5e/v6e's 128 MiB, ≈48 MiB on v7x's 64 MiB).  Safe fallback: 48 MiB."""
    try:
        cap = int(pltpu.get_tpu_info().vmem_capacity_bytes)
        if cap <= 0:
            raise ValueError("bad vmem capacity")
        mib = max(32, min(100, (cap * 3) // (4 * 1024 * 1024)))
        return int(mib) * 1024 * 1024
    except Exception:
        return 48 * 1024 * 1024


def self_attention(x, w_qkv, w_proj, b_proj, *, num_heads=1, q_tile=256):
    """x: (B, N, D) f32; w_qkv: (D, 3D) (in,out); w_proj: (D, D); b_proj: (1, D)."""
    B, N, D = x.shape
    assert D % num_heads == 0, "dim must be divisible by num_heads"
    hd = D // num_heads
    scale = hd ** (-0.5)

    # Host-side weight prep (cheap, once):
    #  - fold the softmax scale into the Q projection,
    #  - keep Q/K/V/proj weights as full (D, D) matrices so every projection
    #    GEMM runs at full MXU width (heads are static lane slices in-kernel),
    #  - cast weights to bf16 for native-rate MXU matmuls.
    w_q = (w_qkv[:, 0 * D:1 * D] * scale).astype(jnp.bfloat16)       # (D, D)
    w_k = w_qkv[:, 1 * D:2 * D].astype(jnp.bfloat16)                 # (D, D)
    w_v = w_qkv[:, 2 * D:3 * D].astype(jnp.bfloat16)                 # (D, D)
    w_o = w_proj.astype(jnp.bfloat16)                                # (D, D)
    b_o = b_proj.reshape(1, D).astype(jnp.float32)                   # (1, D)

    # Query tiling: whole sequence in one tile if short, otherwise q_tile-row
    # tiles with the sequence padded to a multiple of q_tile.  Padded key
    # columns are masked in-kernel; padded query rows are sliced off below.
    # (Sweep q_tile upward -- e.g. 512 on v5e/v6e -- for large workloads.)
    if N <= q_tile:
        tq = N
        n_pad = N
    else:
        tq = q_tile
        n_pad = ((N + tq - 1) // tq) * tq
    n_q_tiles = n_pad // tq
    x_in = x if n_pad == N else jnp.pad(x, ((0, 0), (0, n_pad - N), (0, 0)))

    kernel = functools.partial(_self_attention_kernel,
                               num_heads=num_heads, n_valid=N)

    cost = pl.CostEstimate(
        flops=B * (8 * N * D * D + 4 * N * N * D),
        transcendentals=B * num_heads * N * N,
        bytes_accessed=(B * n_pad * D * 4          # x (read once)
                        + 4 * D * D * 2            # bf16 weights
                        + D * 4                    # bias
                        + B * n_pad * D * 4))      # output

    out = pl.pallas_call(
        kernel,
        out_shape=jax.ShapeDtypeStruct((B, n_pad, D), x.dtype),
        grid_spec=pltpu.PrefetchScalarGridSpec(
            num_scalar_prefetch=0,
            grid=(B, n_q_tiles),
            in_specs=[
                # Full (padded) sequence of this batch element; constant
                # across query tiles -> fetched once per batch element.
                pl.BlockSpec((1, n_pad, D), lambda b, qi: (b, 0, 0)),
                pl.BlockSpec((D, D), lambda b, qi: (0, 0)),   # Wq (scaled)
                pl.BlockSpec((D, D), lambda b, qi: (0, 0)),   # Wk
                pl.BlockSpec((D, D), lambda b, qi: (0, 0)),   # Wv
                pl.BlockSpec((D, D), lambda b, qi: (0, 0)),   # Wproj
                pl.BlockSpec((1, D), lambda b, qi: (0, 0)),   # bias
            ],
            out_specs=pl.BlockSpec((1, tq, D), lambda b, qi: (b, qi, 0)),
            scratch_shapes=[
                pltpu.VMEM((n_pad, D), jnp.bfloat16),   # cached K (all heads)
                pltpu.VMEM((n_pad, D), jnp.bfloat16),   # cached V (all heads)
                pltpu.VMEM((tq, D), jnp.bfloat16),      # per-head contexts
            ],
        ),
        compiler_params=pltpu.CompilerParams(
            # Batch is independent -> megacore-parallel.  Query tiles MUST
            # stay sequential ("arbitrary"): they reuse the K/V scratch cache
            # written at qi == 0.  Do not reorder/parallelize qi without
            # hoisting the K/V projection out of the kernel.
            dimension_semantics=("parallel", "arbitrary"),
            vmem_limit_bytes=_vmem_limit_bytes(),
        ),
        cost_estimate=cost,
    )(x_in, w_q, w_k, w_v, w_o, b_o)

    return out if n_pad == N else out[:, :N]


def self_attention_reference(x, w_qkv, w_proj, b_proj, *, num_heads=1):
    """Pure-jnp fp32 reference matching the PyTorch forward."""
    B, N, D = x.shape
    hd = D // num_heads
    scale = hd ** (-0.5)
    qkv = jnp.einsum("bnd,de->bne", x, w_qkv)
    qkv = qkv.reshape(B, N, 3, num_heads, hd).transpose(2, 0, 3, 1, 4)
    q, k, v = qkv[0], qkv[1], qkv[2]                        # (B, H, N, hd)
    attn = jnp.einsum("bhqd,bhkd->bhqk", q, k) * scale
    attn = jax.nn.softmax(attn, axis=-1)
    ctx = jnp.einsum("bhqk,bhkd->bhqd", attn, v)
    ctx = ctx.transpose(0, 2, 1, 3).reshape(B, N, D)
    return jnp.einsum("bnd,de->bne", ctx, w_proj) + b_proj[0]


def _make_inputs(key, B, N, D):
    k_x, k_qkv, k_pw, k_pb = jax.random.split(key, 4)
    x = jax.random.normal(k_x, (B, N, D), dtype=jnp.float32)
    w_qkv = jax.random.normal(k_qkv, (D, 3 * D), dtype=jnp.float32) * 0.05
    w_proj = jax.random.normal(k_pw, (D, D), dtype=jnp.float32) * 0.05
    b_proj = jax.random.normal(k_pb, (1, D), dtype=jnp.float32) * 0.05
    return x, w_qkv, w_proj, b_proj


if __name__ == "__main__":
    key = jax.random.PRNGKey(0)
    k1, k2, k3 = jax.random.split(key, 3)

    # Config 1: module defaults (num_heads=1), small shapes: B=2, N=8, D=32.
    x, w_qkv, w_proj, b_proj = _make_inputs(k1, B=2, N=8, D=32)
    out = jax.block_until_ready(
        self_attention(x, w_qkv, w_proj, b_proj, num_heads=1))
    ref = self_attention_reference(x, w_qkv, w_proj, b_proj, num_heads=1)
    assert out.shape == ref.shape
    assert jnp.allclose(out, ref, atol=2e-2, rtol=2e-2), "mismatch (H=1)"

    # Config 2: multi-head path: B=2, N=16, D=64, heads=4.
    x2, w_qkv2, w_proj2, b_proj2 = _make_inputs(k2, B=2, N=16, D=64)
    out2 = jax.block_until_ready(
        self_attention(x2, w_qkv2, w_proj2, b_proj2, num_heads=4))
    ref2 = self_attention_reference(x2, w_qkv2, w_proj2, b_proj2, num_heads=4)
    assert out2.shape == ref2.shape
    assert jnp.allclose(out2, ref2, atol=2e-2, rtol=2e-2), "mismatch (H=4)"

    # Config 3: multi-tile + padding/masking path: B=2, N=12, D=32, heads=2,
    # q_tile=8 -> sequence padded to 16, two query tiles, masked padded keys.
    x3, w_qkv3, w_proj3, b_proj3 = _make_inputs(k3, B=2, N=12, D=32)
    out3 = jax.block_until_ready(
        self_attention(x3, w_qkv3, w_proj3, b_proj3, num_heads=2, q_tile=8))
    ref3 = self_attention_reference(x3, w_qkv3, w_proj3, b_proj3, num_heads=2)
    assert out3.shape == ref3.shape
    assert jnp.allclose(out3, ref3, atol=2e-2, rtol=2e-2), "mismatch (padded)"

    print("KERNEL_OK")
</pallas_src>

<mosaic_0001>
module attributes {stable_mosaic.version = 11 : i64} {
  func.func @_self_attention_kernel(%arg0: i32, %arg1: i32, %arg2: memref<1x8x32xf32, #tpu.memory_space<vmem>>, %arg3: memref<32x32xbf16, #tpu.memory_space<vmem>>, %arg4: memref<32x32xbf16, #tpu.memory_space<vmem>>, %arg5: memref<32x32xbf16, #tpu.memory_space<vmem>>, %arg6: memref<32x32xbf16, #tpu.memory_space<vmem>>, %arg7: memref<1x32xf32, #tpu.memory_space<vmem>>, %arg8: memref<1x8x32xf32, #tpu.memory_space<vmem>>, %arg9: memref<8x32xbf16, #tpu.memory_space<vmem>>, %arg10: memref<8x32xbf16, #tpu.memory_space<vmem>>, %arg11: memref<8x32xbf16, #tpu.memory_space<vmem>>) attributes {dimension_semantics = [#tpu.dimension_semantics<parallel>, #tpu.dimension_semantics<arbitrary>], iteration_bounds = array<i64: 2, 1>, scalar_prefetch = 0 : i64, scratch_operands = 3 : i64, tpu.core_type = #tpu.core_type<tc>, window_params = [{transform_indices = @transform_0, window_bounds = array<i64: 1, 8, 32>}, {pipeline_mode = #tpu.pipeline_mode<synchronous>, transform_indices = @transform_1, window_bounds = array<i64: 32, 32>}, {pipeline_mode = #tpu.pipeline_mode<synchronous>, transform_indices = @transform_2, window_bounds = array<i64: 32, 32>}, {pipeline_mode = #tpu.pipeline_mode<synchronous>, transform_indices = @transform_3, window_bounds = array<i64: 32, 32>}, {pipeline_mode = #tpu.pipeline_mode<synchronous>, transform_indices = @transform_4, window_bounds = array<i64: 32, 32>}, {pipeline_mode = #tpu.pipeline_mode<synchronous>, transform_indices = @transform_5, window_bounds = array<i64: 1, 32>}, {transform_indices = @transform_6, window_bounds = array<i64: 1, 8, 32>}]} {
    %c0_i32 = arith.constant 0 : i32
    %0 = arith.cmpi eq, %arg1, %c0_i32 : i32
    %1 = arith.extui %0 : i1 to i32
    %c0_i32_0 = arith.constant 0 : i32
    %2 = arith.cmpi ne, %1, %c0_i32_0 : i32
    scf.if %2 {
      %c0_24 = arith.constant 0 : index
      %c0_25 = arith.constant 0 : index
      %c0_26 = arith.constant 0 : index
      %38 = vector.load %arg2[%c0_24, %c0_25, %c0_26] : memref<1x8x32xf32, #tpu.memory_space<vmem>>, vector<1x8x32xf32>
      %39 = vector.shape_cast %38 : vector<1x8x32xf32> to vector<8x32xf32>
      %40 = arith.truncf %39 : vector<8x32xf32> to vector<8x32xbf16>
      %c0_27 = arith.constant 0 : index
      %c0_28 = arith.constant 0 : index
      %41 = vector.load %arg4[%c0_27, %c0_28] : memref<32x32xbf16, #tpu.memory_space<vmem>>, vector<32x32xbf16>
      %cst_29 = arith.constant dense<0.000000e+00> : vector<8x32xf32>
      %42 = tpu.matmul %40, %41, %cst_29 {dimension_numbers = #tpu.dot_dimension_numbers<[1], [0], [0], [1], [0, 0, 1, 1], [], []>} : vector<8x32xbf16>, vector<32x32xbf16>, vector<8x32xf32> -> vector<8x32xf32>
      %43 = arith.truncf %42 : vector<8x32xf32> to vector<8x32xbf16>
      %c0_30 = arith.constant 0 : index
      %c0_31 = arith.constant 0 : index
      %44 = vector.load %arg9[%c0_30, %c0_31] : memref<8x32xbf16, #tpu.memory_space<vmem>>, vector<8x32xbf16>
      tpu.vector_store %arg9[%c0_30, %c0_31], %43 {strides = array<i32>} : memref<8x32xbf16, #tpu.memory_space<vmem>>, vector<8x32xbf16>,
      %c0_32 = arith.constant 0 : index
      %c0_33 = arith.constant 0 : index
      %45 = vector.load %arg5[%c0_32, %c0_33] : memref<32x32xbf16, #tpu.memory_space<vmem>>, vector<32x32xbf16>
      %cst_34 = arith.constant dense<0.000000e+00> : vector<8x32xf32>
      %46 = tpu.matmul %40, %45, %cst_34 {dimension_numbers = #tpu.dot_dimension_numbers<[1], [0], [0], [1], [0, 0, 1, 1], [], []>} : vector<8x32xbf16>, vector<32x32xbf16>, vector<8x32xf32> -> vector<8x32xf32>
      %47 = arith.truncf %46 : vector<8x32xf32> to vector<8x32xbf16>
      %c0_35 = arith.constant 0 : index
      %c0_36 = arith.constant 0 : index
      %48 = vector.load %arg10[%c0_35, %c0_36] : memref<8x32xbf16, #tpu.memory_space<vmem>>, vector<8x32xbf16>
      tpu.vector_store %arg10[%c0_35, %c0_36], %47 {strides = array<i32>} : memref<8x32xbf16, #tpu.memory_space<vmem>>, vector<8x32xbf16>,
    } else {
    }
    %c8_i32 = arith.constant 8 : i32
    %3 = arith.muli %arg1, %c8_i32 : i32
    %4 = tpu.assume_multiple %3, 8 : i32
    %c0 = arith.constant 0 : index
    %5 = arith.index_cast %4 : i32 to index
    %c0_1 = arith.constant 0 : index
    %6 = vector.load %arg2[%c0, %5, %c0_1] : memref<1x8x32xf32, #tpu.memory_space<vmem>>, vector<1x8x32xf32>
    %7 = vector.shape_cast %6 : vector<1x8x32xf32> to vector<8x32xf32>
    %8 = arith.truncf %7 : vector<8x32xf32> to vector<8x32xbf16>
    %c0_2 = arith.constant 0 : index
    %c0_3 = arith.constant 0 : index
    %9 = vector.load %arg3[%c0_2, %c0_3] : memref<32x32xbf16, #tpu.memory_space<vmem>>, vector<32x32xbf16>
    %cst = arith.constant dense<0.000000e+00> : vector<8x32xf32>
    %10 = tpu.matmul %8, %9, %cst {dimension_numbers = #tpu.dot_dimension_numbers<[1], [0], [0], [1], [0, 0, 1, 1], [], []>} : vector<8x32xbf16>, vector<32x32xbf16>, vector<8x32xf32> -> vector<8x32xf32>
    %11 = arith.truncf %10 : vector<8x32xf32> to vector<8x32xbf16>
    %c0_4 = arith.constant 0 : index
    %c0_5 = arith.constant 0 : index
    %12 = vector.load %arg9[%c0_4, %c0_5] : memref<8x32xbf16, #tpu.memory_space<vmem>>, vector<8x32xbf16>
    %c0_6 = arith.constant 0 : index
    %c0_7 = arith.constant 0 : index
    %13 = vector.load %arg10[%c0_6, %c0_7] : memref<8x32xbf16, #tpu.memory_space<vmem>>, vector<8x32xbf16>
    %cst_8 = arith.constant dense<0.000000e+00> : vector<8x8xf32>
    %14 = tpu.matmul %11, %12, %cst_8 {dimension_numbers = #tpu.dot_dimension_numbers<[1], [1], [0], [0], [0, 0, 1, 0], [], []>} : vector<8x32xbf16>, vector<8x32xbf16>, vector<8x8xf32> -> vector<8x8xf32>
    %cst_9 = arith.constant dense<0xFF800000> : vector<8xf32>
    %15 = vector.multi_reduction <maximumf>, %14, %cst_9 [1] : vector<8x8xf32> to vector<8xf32>
    %16 = vector.shape_cast %15 : vector<8xf32> to vector<8x1xf32>
    %17 = vector.broadcast %16 : vector<8x1xf32> to vector<8x8xf32>
    %18 = arith.subf %14, %17 : vector<8x8xf32>
    %19 = math.exp %18 : vector<8x8xf32>
    %cst_10 = arith.constant dense<0.000000e+00> : vector<8xf32>
    %20 = vector.multi_reduction <add>, %19, %cst_10 [1] : vector<8x8xf32> to vector<8xf32>
    %21 = vector.shape_cast %20 : vector<8xf32> to vector<8x1xf32>
    %22 = arith.truncf %19 : vector<8x8xf32> to vector<8x8xbf16>
    %cst_11 = arith.constant dense<0.000000e+00> : vector<8x32xf32>
    %23 = tpu.matmul %22, %13, %cst_11 {dimension_numbers = #tpu.dot_dimension_numbers<[1], [0], [0], [1], [0, 0, 1, 1], [], []>} : vector<8x8xbf16>, vector<8x32xbf16>, vector<8x32xf32> -> vector<8x32xf32>
    %24 = tpu.reciprocal %21 {approx = true} : vector<8x1xf32> -> vector<8x1xf32>
    %25 = vector.broadcast %24 : vector<8x1xf32> to vector<8x32xf32>
    %26 = arith.mulf %23, %25 : vector<8x32xf32>
    %27 = arith.truncf %26 : vector<8x32xf32> to vector<8x32xbf16>
    %c0_12 = arith.constant 0 : index
    %c0_13 = arith.constant 0 : index
    %28 = vector.load %arg11[%c0_12, %c0_13] : memref<8x32xbf16, #tpu.memory_space<vmem>>, vector<8x32xbf16>
    tpu.vector_store %arg11[%c0_12, %c0_13], %27 {strides = array<i32>} : memref<8x32xbf16, #tpu.memory_space<vmem>>, vector<8x32xbf16>,
    %c0_14 = arith.constant 0 : index
    %c0_15 = arith.constant 0 : index
    %29 = vector.load %arg11[%c0_14, %c0_15] : memref<8x32xbf16, #tpu.memory_space<vmem>>, vector<8x32xbf16>
    %c0_16 = arith.constant 0 : index
    %c0_17 = arith.constant 0 : index
    %30 = vector.load %arg6[%c0_16, %c0_17] : memref<32x32xbf16, #tpu.memory_space<vmem>>, vector<32x32xbf16>
    %cst_18 = arith.constant dense<0.000000e+00> : vector<8x32xf32>
    %31 = tpu.matmul %29, %30, %cst_18 {dimension_numbers = #tpu.dot_dimension_numbers<[1], [0], [0], [1], [0, 0, 1, 1], [], []>} : vector<8x32xbf16>, vector<32x32xbf16>, vector<8x32xf32> -> vector<8x32xf32>
    %c0_19 = arith.constant 0 : index
    %c0_20 = arith.constant 0 : index
    %32 = vector.load %arg7[%c0_19, %c0_20] : memref<1x32xf32, #tpu.memory_space<vmem>>, vector<1x32xf32>
    %33 = vector.broadcast %32 : vector<1x32xf32> to vector<8x32xf32>
    %34 = arith.addf %31, %33 : vector<8x32xf32>
    %c0_21 = arith.constant 0 : index
    %c0_22 = arith.constant 0 : index
    %c0_23 = arith.constant 0 : index
    %35 = vector.load %arg8[%c0_21, %c0_22, %c0_23] : memref<1x8x32xf32, #tpu.memory_space<vmem>>, vector<1x8x32xf32>
    %36 = vector.shape_cast %35 : vector<1x8x32xf32> to vector<8x32xf32>
    %37 = vector.shape_cast %34 : vector<8x32xf32> to vector<1x8x32xf32>
    tpu.vector_store %arg8[%c0_21, %c0_22, %c0_23], %37 {strides = array<i32>} : memref<1x8x32xf32, #tpu.memory_space<vmem>>, vector<1x8x32xf32>,
    return
  }
  func.func @transform_0(%arg0: i32, %arg1: i32) -> (i32, i32, i32) {
    %c0_i32 = arith.constant 0 : i32
    %c0_i32_0 = arith.constant 0 : i32
    %c0_i32_1 = arith.constant 0 : i32
    return %arg0, %c0_i32, %c0_i32_0 : i32, i32, i32
  }
  func.func @transform_1(%arg0: i32, %arg1: i32) -> (i32, i32) {
    %c0_i32 = arith.constant 0 : i32
    %c0_i32_0 = arith.constant 0 : i32
    %c0_i32_1 = arith.constant 0 : i32
    return %c0_i32, %c0_i32_0 : i32, i32
  }
  func.func @transform_2(%arg0: i32, %arg1: i32) -> (i32, i32) {
    %c0_i32 = arith.constant 0 : i32
    %c0_i32_0 = arith.constant 0 : i32
    %c0_i32_1 = arith.constant 0 : i32
    return %c0_i32, %c0_i32_0 : i32, i32
  }
  func.func @transform_3(%arg0: i32, %arg1: i32) -> (i32, i32) {
    %c0_i32 = arith.constant 0 : i32
    %c0_i32_0 = arith.constant 0 : i32
    %c0_i32_1 = arith.constant 0 : i32
    return %c0_i32, %c0_i32_0 : i32, i32
  }
  func.func @transform_4(%arg0: i32, %arg1: i32) -> (i32, i32) {
    %c0_i32 = arith.constant 0 : i32
    %c0_i32_0 = arith.constant 0 : i32
    %c0_i32_1 = arith.constant 0 : i32
    return %c0_i32, %c0_i32_0 : i32, i32
  }
  func.func @transform_5(%arg0: i32, %arg1: i32) -> (i32, i32) {
    %c0_i32 = arith.constant 0 : i32
    %c0_i32_0 = arith.constant 0 : i32
    %c0_i32_1 = arith.constant 0 : i32
    return %c0_i32, %c0_i32_0 : i32, i32
  }
  func.func @transform_6(%arg0: i32, %arg1: i32) -> (i32, i32, i32) {
    %c0_i32 = arith.constant 0 : i32
    %c0_i32_0 = arith.constant 0 : i32
    return %arg0, %arg1, %c0_i32 : i32, i32, i32
  }
}

</mosaic_0001>

<bundles_post_ra>
// kernel: tpu_custom_call.1
= control target key start
LH: loop header
LB: loop body
LE: loop exit
PB: predicated region body
PF: predicated region fallthrough
CT: control target
= control target key end

     0   :  { %s1685_s0 = inlined_call_operand.hbm [shape: f32[2,8,32], index: 0, kind: input, shape index: {}]   ;;  %s1686_s1 = inlined_call_operand.hbm [shape: bf16[32,32], index: 1, kind: input, shape index: {}]   ;;  %s1687_s2 = inlined_call_operand.hbm [shape: bf16[32,32], index: 2, kind: input, shape index: {}]   ;;  %s1688_s3 = inlined_call_operand.hbm [shape: bf16[32,32], index: 3, kind: input, shape index: {}]   ;;  %s1689_s4 = inlined_call_operand.hbm [shape: bf16[32,32], index: 4, kind: input, shape index: {}]   ;;  %s1690_s5 = inlined_call_operand.vmem [shape: f32[1,32], index: 5, kind: input, shape index: {}]   ;;  %s1691_s6 = inlined_call_operand.hbm [shape: f32[2,8,32], index: 6, kind: output, shape index: {}]  }
   0x1   :  { %1697 = sst [smem:[#allocation19_spill]] %s1686_s1 }
   0x2   :  { %11 = vsyncpa [#allocation6], 0 }
   0x3   :  { %13 = vsyncpa [#allocation6 + $0x1], 0 }
   0x4   :  { %14 = vsyncpa [#allocation9], 0 }
   0x5   :  { %15 = vsyncpa [#allocation12], 0 }
   0x6   :  { %16 = vsyncpa [#allocation7], 0 }
   0x7   :  { %18 = vsyncpa [#allocation7 + $0x1], 0  ;;  %s1339_s21 = smov 0   ;;  %s1341_s22 = smov 0  }
   0x8   :  { %s1343_s23 = smov 0   ;;  %s1345_s24 = smov 0  }
   0x9   :  { %s1347_s25 = smov 0   ;;  %s1349_s26 = smov 0  }
   0xa LB: > { %s1692_s27 = sadd.s32 4294967295, %s1292_s26   ;;  %p847_p0 = scmp.ge.s32.totalorder %s1292_s26, 1  ;;  %s1292_s26 = sphi %s1349_s26, %s24_s26   ;;  %s1288_s25 = sphi %s1347_s25, %s1719_s25   ;;  %s1284_s24 = sphi %s1345_s24, %s1718_s24   ;;  %s1280_s23 = sphi %s1343_s23, %s1717_s23   ;;  %s1276_s22 = sphi %s1341_s22, %s1716_s22   ;;  %s1272_s21 = sphi %s1339_s21, %s1715_s21  }
   0xb   : > { %p1373_p1 = scmp.eq.s32.totalorder %s1692_s27, 0  ;;  %p200_p2 = scmp.lt.s32.totalorder %s1292_s26, 3 }
   0xc   : > { %s1294_s30 = smov [#allocation8]   ;;  %s1295_s9 = smov [#allocation11]  }
   0xd   : > { %s1698_s28 = scalar_select %p1373_p1, 1, 0 }
   0xe   : > { %p1378_p3 = pnand %p847_p0, %p200_p2  ;;  %s212_s7 = sshll.u32 %s1294_s30, 4  ;;  %s1382_s7 = int_to_ptr.vmem [resolvable:$true] %s212_s7 }
   0xf   : > { %s238_s10 = sshll.u32 %s1295_s9, 4  ;;  %s1296_s11 = smov [#allocation10]   ;;  %s1393_s10 = int_to_ptr.vmem [resolvable:$true] %s238_s10 }
  0x10   : > { %s1699_s29 = scalar_select %p1378_p3, 1, 0 }
  0x11   : > { %p961_p4 = pneg %p1378_p3  ;;  %s1395_s12 = sshll.u32 %s1296_s11, 4  ;;  %s226_s12 = int_to_ptr.vmem [resolvable:$true] %s1395_s12 }
  0x12   : > { %s1701_s1 = sld [smem:[#allocation19_spill]] }
  0x13   : > { %p1389_p6 = pnand %p961_p4, %p1373_p1 }
  0x15   : > { %p1405_p8 = pneg %p1389_p6 }
  0x18   : > { %s1060_s15 = scalar_lea.hbm %s1701_s1, 256 }
  0x19   : > { %p1061_p7 = scmp.ne.s32.totalorder %s1701_s1, %s1060_s15  ;;  %p1067_p11 = scmp.lt.u32.totalorder %s1060_s15, %s1701_s1 }
  0x1b   : > { %p1063_p9 = pnand %p1405_p8, %p1061_p7 }
  0x1d   : > { %p1064_p10 = pneg %p1063_p9 }
  0x1f   : > { %p1069_p12 = pnand %p1067_p11, %p1064_p10 }
  0x21   : > { %1072 = shalt.err (!%p1069_p12)
}
  0x22   : > { %s1073_s30 = scalar_lea.vmem %s1382_s7, 256  ;;  %p1081_p4 = scmp.lt.s32.totalorder %s1382_s7, %s1382_s7 }
  0x23   : > { %p1074_p13 = scmp.ne.s32.totalorder %s1382_s7, %s1073_s30  ;;  %p1082_p5 = scmp.lt.s32.totalorder %s1073_s30, %s1073_s30 }
  0x25   : > { %p1076_p0 = pnand %p1074_p13, %p1405_p8  ;;  %p1083_p7 = por %p1082_p5, %p1081_p4 }
  0x27   : > { %p1077_p2 = pneg %p1076_p0 }
  0x29   : > { %p1084_p9 = pnand %p1083_p7, %p1077_p2 }
  0x2b   : > { %1087 = shalt.err (!%p1084_p9)
}
  0x2c   : > { %s1297_s9 = smov 64   ;;  %s1298_s11 = smov 4  }
  0x2d   : > { %964 = dma.hbm_to_vmem [thread:$0]  (!%p1389_p6), %s1701_s1, 256, %s1382_s7, [#allocation9], %s1297_s9, %s1297_s9, %s1298_s11  }
  0x2e   : > { %s1088_s17 = scalar_lea.hbm %s1688_s3, 256 }
  0x2f   : > { %p1089_p5 = scmp.ne.s32.totalorder %s1688_s3, %s1088_s17  ;;  %p1095_p12 = scmp.lt.u32.totalorder %s1088_s17, %s1688_s3 }
  0x31   : > { %p1091_p10 = pnand %p1089_p5, %p1405_p8 }
  0x33   : > { %p1092_p11 = pneg %p1091_p10 }
  0x35   : > { %p1097_p13 = pnand %p1095_p12, %p1092_p11 }
  0x37   : > { %1100 = shalt.err (!%p1097_p13)
}
  0x38   : > { %s1101_s7 = scalar_lea.vmem %s1393_s10, 256  ;;  %p1109_p7 = scmp.lt.s32.totalorder %s1393_s10, %s1393_s10 }
  0x39   : > { %p1102_p0 = scmp.ne.s32.totalorder %s1393_s10, %s1101_s7  ;;  %p1110_p9 = scmp.lt.s32.totalorder %s1101_s7, %s1101_s7 }
  0x3b   : > { %p1104_p2 = pnand %p1102_p0, %p1405_p8  ;;  %p1111_p5 = por %p1110_p9, %p1109_p7 }
  0x3d   : > { %p1105_p4 = pneg %p1104_p2 }
  0x3f   : > { %p1112_p10 = pnand %p1111_p5, %p1105_p4 }
  0x41   : > { %1115 = shalt.err (!%p1112_p10)
}
  0x42   : > { %970 = dma.hbm_to_vmem [thread:$0]  (!%p1389_p6), %s1688_s3, 256, %s1393_s10, [#allocation12], %s1297_s9, %s1297_s9, %s1298_s11  }
  0x43   : > { %s1116_s16 = scalar_lea.hbm %s1687_s2, 256 }
  0x44   : > { %p1117_p11 = scmp.ne.s32.totalorder %s1687_s2, %s1116_s16  ;;  %p1123_p0 = scmp.lt.u32.totalorder %s1116_s16, %s1687_s2 }
  0x46   : > { %p1119_p12 = pnand %p1117_p11, %p1405_p8 }
  0x48   : > { %p1120_p13 = pneg %p1119_p12 }
  0x4a   : > { %p1125_p2 = pnand %p1123_p0, %p1120_p13 }
  0x4c   : > { %1128 = shalt.err (!%p1125_p2)
}
  0x4d   : > { %s1129_s7 = scalar_lea.vmem %s226_s12, 256  ;;  %p1137_p5 = scmp.lt.s32.totalorder %s226_s12, %s226_s12 }
  0x4e   : > { %p1130_p4 = scmp.ne.s32.totalorder %s226_s12, %s1129_s7  ;;  %p1138_p10 = scmp.lt.s32.totalorder %s1129_s7, %s1129_s7 }
  0x50   : > { %p1132_p7 = pnand %p1130_p4, %p1405_p8  ;;  %p1139_p3 = por %p1138_p10, %p1137_p5 }
  0x52   : > { %p1133_p9 = pneg %p1132_p7 }
  0x54   : > { %p1140_p1 = pnand %p1139_p3, %p1133_p9 }
  0x56   : > { %1143 = shalt.err (!%p1140_p1)
}
  0x57   : > { %967 = dma.hbm_to_vmem [thread:$0]  (!%p1389_p6), %s1687_s2, 256, %s226_s12, [#allocation9], %s1297_s9, %s1297_s9, %s1298_s11  }
  0x58   : > { %s1299_s13 = smov [#allocation13]   ;;  %s1144_s17 = scalar_lea.hbm %s1689_s4, 256 }
  0x59   : > { %s251_s14 = sshll.u32 %s1299_s13, 4  ;;  %p1145_p1 = scmp.ne.s32.totalorder %s1689_s4, %s1144_s17  ;;  %s252_s14 = int_to_ptr.vmem [resolvable:$true] %s251_s14 }
  0x5a   : > { %p1151_p12 = scmp.lt.u32.totalorder %s1144_s17, %s1689_s4 }
  0x5b   : > { %p1147_p3 = pnand %p1145_p1, %p1405_p8 }
  0x5d   : > { %p1148_p11 = pneg %p1147_p3 }
  0x5f   : > { %p1153_p13 = pnand %p1151_p12, %p1148_p11 }
  0x61   : > { %1156 = shalt.err (!%p1153_p13)
}
  0x62   : > { %s1157_s12 = scalar_lea.vmem %s252_s14, 256  ;;  %p1165_p7 = scmp.lt.s32.totalorder %s252_s14, %s252_s14 }
  0x63   : > { %p1158_p0 = scmp.ne.s32.totalorder %s252_s14, %s1157_s12  ;;  %p1166_p9 = scmp.lt.s32.totalorder %s1157_s12, %s1157_s12 }
  0x65   : > { %p1160_p2 = pnand %p1158_p0, %p1405_p8  ;;  %p1167_p5 = por %p1166_p9, %p1165_p7 }
  0x67   : > { %p1161_p4 = pneg %p1160_p2 }
  0x69   : > { %p1168_p10 = pnand %p1167_p5, %p1161_p4 }
  0x6b   : > { %1171 = shalt.err (!%p1168_p10)
}
  0x6c   : > { %973 = dma.hbm_to_vmem [thread:$0]  (!%p1389_p6), %s1689_s4, 256, %s252_s14, [#allocation12], %s1297_s9, %s1297_s9, %s1298_s11  }
  0x6d   : > { %s846_s8 = sadd.s32 4294967294, %s1292_s26   ;;  %s36_s18 = sadd.s32 1, %s1288_s25 }
  0x6e   : > { %p38_p8 = scmp.ge.s32.totalorder %s36_s18, 2  ;;  %s43_s13 = sadd.s32 1, %s1280_s23 }
  0x6f   : > { %p50_p1 = scmp.ne.s32.totalorder %s1280_s23, %s1276_s22  ;;  %p51_p3 = scmp.eq.s32.totalorder %s1292_s26, 0 }
  0x70   : > { %s1721_s18 = smov (%p38_p8, %s36_s18), 0  ;;  %p56_p12 = scmp.ne.s32.totalorder %s1276_s22, %s1272_s21 }
  0x71   : > { %p1506_p11 = por %p51_p3, %p50_p1  ;;  %s40_s9 = ssub.s32 %s1288_s25, %s1721_s18 }
  0x72   : > { %s1704_s11 = sadd.s32 4294967295, %s1292_s26   ;;  %p41_p13 = scmp.eq.s32.totalorder %s40_s9, 0 }
  0x73   : > { %p187_p6 = scmp.eq.s32.totalorder %s1704_s11, 1  ;;  %p1705_p0 = scmp.ne.s32.totalorder %s1698_s28, 0 }
  0x74   : > { %p193_p7 = scmp.eq.s32.totalorder %s846_s8, 1  ;;  %p986_p5 = scmp.lt.s32.totalorder %s1292_s26, 2 }
  0x75   : > { %p1518_p2 = por %p1705_p0, %p56_p12  ;;  %p1522_p4 = por %p187_p6, %p50_p1 }
  0x76   : > { %s1527_s17 = scalar_select %p41_p13, %s1280_s23, %s43_s13  }
  0x77   : > { %s1707_s16 = scalar_select %p1522_p4, 1, 0 }
  0x78   : > { %p1529_p9 = por %p193_p7, %p56_p12  ;;  %s268_s20 = sand.u32 1, %s1280_s23  }
  0x79   : > { %s854_s30 = sshll.u32 %s1288_s25, 7  ;;  %s853_s7 = sshll.u32 %s268_s20, 3 }
  0x7a   : > { %s1708_s19 = scalar_select %p1529_p9, 1, 0 }
  0x7b   : > { %s1539_s27 = scalar_lea.hbm %s1685_s0, %s854_s30  ;;  %s272_s8 = scalar_lea.vmem [#allocation5], %s853_s7 }
  0x7c   : > { %s279_s13 = sshll.u32 %s272_s8, 4  ;;  %p1543_p10 = pnand %p986_p5, %p1506_p11  ;;  %s1547_s13 = int_to_ptr.vmem [resolvable:$true] %s279_s13 }
  0x7d   : > { %s269_s11 = scalar_lea.sflag [#allocation6], %s268_s20  ;;  %s1172_s1 = scalar_lea.hbm %s1539_s27, 128 }
  0x7e   : > { %p1173_p8 = scmp.ne.s32.totalorder %s1539_s27, %s1172_s1  ;;  %p1174_p1 = pneg %p1543_p10 }
  0x7f   : > { %s1177_s15 = scalar_lea.hbm %s1685_s0, 256  ;;  %p1178_p11 = scmp.lt.u32.totalorder %s1539_s27, %s1685_s0 }
  0x80   : > { %p1175_p3 = pnand %p1174_p1, %p1173_p8  ;;  %p1179_p6 = scmp.lt.u32.totalorder %s1177_s15, %s1172_s1 }
  0x81   : > { %p1181_p0 = scmp.lt.u32.totalorder %s1172_s1, %s1539_s27 }
  0x82   : > { %p1176_p12 = pneg %p1175_p3  ;;  %p1180_p13 = por %p1179_p6, %p1178_p11 }
  0x84   : > { %p1182_p7 = por %p1181_p0, %p1180_p13 }
  0x86   : > { %p1183_p5 = pnand %p1182_p7, %p1176_p12 }
  0x88   : > { %1186 = shalt.err (!%p1183_p5)
}
  0x89   : > { %s1187_s20 = scalar_lea.vmem %s1547_s13, 128  ;;  %s1300_s8 = smov [#allocation5]  }
  0x8a   : > { %p1188_p8 = scmp.ne.s32.totalorder %s1547_s13, %s1187_s20  ;;  %s1192_s30 = sshll.u32 %s1300_s8, 4  ;;  %s1193_s30 = int_to_ptr.vmem [resolvable:$false] %s1192_s30 }
  0x8b   : > { %s1194_s7 = scalar_lea.vmem %s1193_s30, 256  ;;  %p1195_p4 = scmp.lt.s32.totalorder %s1547_s13, %s1193_s30 }
  0x8c   : > { %p1190_p3 = pnand %p1188_p8, %p1174_p1  ;;  %p1196_p11 = scmp.lt.s32.totalorder %s1194_s7, %s1187_s20 }
  0x8e   : > { %p1191_p9 = pneg %p1190_p3  ;;  %p1197_p6 = por %p1196_p11, %p1195_p4 }
  0x90   : > { %p1198_p13 = pnand %p1197_p6, %p1191_p9 }
  0x92   : > { %1201 = shalt.err (!%p1198_p13)
}
  0x93   : > { %977 = dma.hbm_to_vmem [thread:$0]  (!%p1543_p10), %s1539_s27, 128, %s1547_s13, %s269_s11  }
  0x94   : > { %p1710_p12 = scmp.ne.s32.totalorder %s1699_s29, 0 }
  0x95   : > { %s1577_s1 = sand.u32 (!%p1710_p12), 1, %s1276_s22  }
  0x96   : > { %288 = sbr.rel (%p1710_p12) target bundleno = 1227 (0x4cb), region = 44  ;;  %s856_s15 = sshll.u32 (!%p1710_p12), %s1577_s1, 3 }
  0x97   : > { %s291_s12 = scalar_lea.sflag (!%p1710_p12), [#allocation6], %s1577_s1  ;;  %s294_s10 = scalar_lea.vmem (!%p1710_p12), [#allocation5], %s856_s15 }
  0x9d   : > { %1255 = dma.done.wait (%p1518_p2), %s291_s12, 128  }
  0x9e   : > { %1257 = vsyncadd (%p1518_p2), %s291_s12, 4294967168  ;;  %p1711_p4 = scmp.ne.s32.totalorder %s1698_s28, 0 }
  0xa0   : > { %1259 = dma.done.wait (%p1711_p4), [#allocation9], 512  }
  0xa1   : > { %1261 = vsyncadd (%p1711_p4), [#allocation9], 4294966784 }
  0xa2   : > { %1263 = dma.done.wait (%p1711_p4), [#allocation12], 512  }
  0xa3   : > { %1265 = vsyncadd (%p1711_p4), [#allocation12], 4294966784  ;;  %v1301_v0 = vmov 0.0   ;;  %vm1302_vm0 = vmmov 0   ;;  %v1048_v1 = vld [vmem:[#allocation10] sm:$0xff]   ;;  %v1049_v2 = vld [vmem:[#allocation10 + $0x8] sm:$0xff]  }
  0xa4   : > { %897 = vmatprep.subr.bf16.mxu0 %v1301_v0  ;;  %901 = vmatprep.mubr.msk.bf16.mxu0 %vm1302_vm0, %v1301_v0  ;;  %v344_v3 = vld [vmem:[%s294_s10] sm:$0xff]  ;;  %v1050_v4 = vld [vmem:[#allocation8] sm:$0xff]   ;;  %vm362_vm1 = vcmask 261120   ;;  %v1051_v7 = vld [vmem:[#allocation8 + $0x8] sm:$0xff]   ;;  %vm407_vm2 = vcmask 257024   ;;  %vm594_vm3 = vcmask 1043456  }
  0xa5   : > { %905 = vmatprep.subr.bf16.mxu1 %v1301_v0  ;;  %909 = vmatprep.mubr.msk.bf16.mxu1 %vm1302_vm0, %v1301_v0  ;;  %v345_v5 = vpack.c.bf16 %v344_v3, %v344_v3  ;;  %v1052_v6 = vld [vmem:[#allocation11] sm:$0xff]   ;;  %v1053_v8 = vld [vmem:[#allocation11 + $0x8] sm:$0xff]   ;;  %vm580_vm4 = vcmask 64512   ;;  %v1054_v39 = vld [vmem:[#allocation13] sm:$0xff]   ;;  %s878_s14 = sshll.u32 %s1284_s24, 7  ;;  %s338_s27 = scalar_lea.vmem [#allocation14], %s856_s15 }
  0xa6   : > { %898 = vmatpush3.bf16.msra.mxu0 %v1048_v1  ;;  %906 = vmatpush3.bf16.msra.mxu1 %v1052_v6  ;;  %v1055_v40 = vld [vmem:[#allocation13 + $0x8] sm:$0xff]   ;;  %v873_v50 = vld [vmem:[%s1690_s5] ss:$0 sm:$0xff]  ;;  %s726_s13 = sshll.u32 %s338_s27, 4  ;;  %s1635_s20 = scalar_lea.hbm %s1691_s6, %s878_s14  ;;  %s1637_s13 = int_to_ptr.vmem [resolvable:$true] %s726_s13 }
  0xa7   : > { %899 = vmatprep.subr.bf16.mxu0 %v1301_v0  ;;  %907 = vmatprep.subr.bf16.mxu1 %v1301_v0  ;;  %s712_s24 = scalar_lea.sflag [#allocation7], %s1577_s1  ;;  %s1202_s8 = scalar_lea.vmem %s1637_s13, 128 }
  0xa8   : > { %p1203_p2 = scmp.ne.s32.totalorder %s1637_s13, %s1202_s8  ;;  %p1712_p9 = scmp.ne.s32.totalorder %s1707_s16, 0 }
  0xa9   : > { %s1303_s30 = smov [#allocation14]  }
  0xaa   : > { %900 = vmatpush3.bf16.msra.mxu0 %v1049_v2  ;;  %908 = vmatpush3.bf16.msra.mxu1 %v1053_v8  ;;  %p1204_p10 = pnand %p1203_p2, %p1712_p9  ;;  %s1206_s7 = sshll.u32 %s1303_s30, 4  ;;  %s1207_s7 = int_to_ptr.vmem [resolvable:$false] %s1206_s7 }
  0xab   : > { %913 = vmatprep.subr.bf16.mxu0 %v1301_v0  ;;  %921 = vmatprep.subr.bf16.mxu1 %v1301_v0  ;;  %s1208_s15 = scalar_lea.vmem %s1207_s7, 256  ;;  %p1209_p0 = scmp.lt.s32.totalorder %s1637_s13, %s1207_s7 }
  0xac   : > { %p1205_p1 = pneg %p1204_p10  ;;  %p1210_p7 = scmp.lt.s32.totalorder %s1208_s15, %s1202_s8 }
  0xad   : > { %902 = vmatmul.mubr.msk.bf16.vlgmr.msra.gmra.mrb[0].mxu0 %vm362_vm1, %v345_v5  ;;  %910 = vmatmul.mubr.msk.bf16.vlgmr.msra.gmra.mrb[0].mxu1 %vm362_vm1, %v345_v5 }
  0xae   : > { %914 = vmatpush3.bf16.msra.mxu0 %v1050_v4  ;;  %917 = vmatprep.mubr.msk.bf16.mxu0 %vm1302_vm0, %v1301_v0  ;;  %p1211_p5 = por %p1210_p7, %p1209_p0 }
  0xaf   : > { %915 = vmatprep.subr.bf16.mxu0 %v1301_v0  ;;  %923 = vmatprep.mubr.msk.bf16.mxu1 %vm1302_vm0, %v1301_v0 }
  0xb0   : > { %p1212_p8 = pnand %p1211_p5, %p1205_p1 }
  0xb2   : > { %916 = vmatpush3.bf16.msra.mxu0 %v1051_v7 }
  0xb3   : > { %927 = vmatprep.subr.bf16.mxu0 %v1301_v0 }
  0xb5   : > { %918 = vmatmul.mubr.msk.bf16.vlgmr.msra.gmra.mrb[4].mxu0 %vm362_vm1, %v345_v5 }
  0xb6   : > { %929 = vmatprep.mubr.msk.bf16.mxu0 %vm1302_vm0, %v1301_v0 }
 0x180   : > { %v400_v9 = vpop.f32.mrb[0].mxu0  ;;  %v459_v21 = vpop.f32.mrb[0].mxu1 }
 0x181   : > { %v406_v10 = vpack.c.bf16 %v400_v9, %v400_v9  ;;  %v903_v11 = vpop.f32.mrb[1].mxu0  ;;  %v465_v22 = vpack.c.bf16 %v459_v21, %v459_v21  ;;  %v911_v23 = vpop.f32.mrb[1].mxu1 }
 0x182   : > { %v403_v12 = vpop.f32.mrb[2].mxu0  ;;  %v462_v24 = vpop.f32.mrb[2].mxu1 }
 0x183   : > { %408 = vst.msk [vmem:[#allocation2] sm:$0xf] %vm407_vm2, %v406_v10  ;;  %v904_v13 = vpop.f32.mrb[3].mxu0  ;;  %466 = vst.msk [vmem:[#allocation3] sm:$0xf] %vm407_vm2, %v465_v22  ;;  %v912_v25 = vpop.f32.mrb[3].mxu1 }
 0x188   : > { %v525_v14 = vpop.f32.mrb[4].mxu0 }
 0x189   : > { %v919_v15 = vpop.f32.mrb[5].mxu0  ;;  %v531_v20 = vpack.c.bf16 %v525_v14, %v525_v14 }
 0x18a   : > { %v532_v16 = vld [vmem:[#allocation2] sm:$0xf]  ;;  %v528_v17 = vpop.f32.mrb[6].mxu0  ;;  %v533_v26 = vld [vmem:[#allocation3] sm:$0xf] }
 0x18b   : > { %v538_v18 = vsel %vm362_vm1, %v532_v16, 0  ;;  %v920_v19 = vpop.f32.mrb[7].mxu0  ;;  %v596_v27 = vsel %vm594_vm3, %v533_v26, 0 }
 0x18c   : > { %922 = vmatpush3.bf16.xpose.msra.mxu1 %v538_v18  ;;  %928 = vmatpush3.bf16.msra.mxu0 %v596_v27 }
 0x18d   : > { %933 = vmatprep.subr.bf16.mxu1 %v1301_v0 }
 0x193   : > { %924 = vmatmul.mubr.msk.bf16.vlgmr.msra.gmra.mrb[4].mxu1 %vm362_vm1, %v531_v20 }
 0x194   : > { %937 = vmatprep.mubr.msk.bf16.mxu1 %vm1302_vm0, %v1301_v0  ;;  %934 = vmatpush3.bf16.msra.mxu1 %v1054_v39 }
 0x195   : > { %935 = vmatprep.subr.bf16.mxu1 %v1301_v0 }
 0x198   : > { %936 = vmatpush3.bf16.msra.mxu1 %v1055_v40 }
 0x266   : > { %v574_v28 = vpop.f32.mrb[4].mxu1 }
 0x267   : > { %v925_v29 = vpop.f32.mrb[5].mxu1  ;;  %v581_v30 = vsel %vm580_vm4, %v574_v28, -inf }
 0x268   : > { %582 = vmax.xlane.f32.xlu0 %v581_v30  ;;  %v577_v31 = vpop.f32.mrb[6].mxu1 }
 0x269   : > { %v926_v32 = vpop.f32.mrb[7].mxu1 }
 0x2f5   : > { %v583_v33 = vpop.xlane.xlu0 %582 }
 0x2f6   : > { %v584_v34 = vsub.f32 %v574_v28, %v583_v33 }
 0x2f8   : > { %v585_v35 = vmul.f32 1.442695, %v584_v34 }
 0x2fa   : > { %1056 = vpow2.f32 %v585_v35 }
 0x304   : > { %v1057_v36 = vpop.eup %1056 }
 0x305   : > { %v587_v37 = vsel %vm580_vm4, %v1057_v36, 0.0  ;;  %v590_v38 = vpack.c.bf16 %v1057_v36, %v1057_v36 }
 0x306   : > { %588 = vadd.xlane.f32.xlu0 %v587_v37 }
 0x307   : > { %930 = vmatmul.mubr.msk.bf16.vlgmr.msra.gmra.mrb[8].mxu0 %vm580_vm4, %v590_v38 }
 0x393   : > { %v589_v41 = vpop.xlane.xlu0 %588 }
 0x394   : > { %1058 = vrcp.f32 %v589_v41 }
 0x39e   : > { %v1059_v42 = vpop.eup %1058 }
 0x3da   : > { %v632_v43 = vpop.f32.mrb[8].mxu0 }
 0x3db   : > { %v639_v44 = vmul.f32 %v1059_v42, %v632_v43  ;;  %v931_v45 = vpop.f32.mrb[9].mxu0 }
 0x3dc   : > { %v635_v46 = vpop.f32.mrb[10].mxu0 }
 0x3dd   : > { %v640_v47 = vpack.c.bf16 %v639_v44, %v639_v44  ;;  %v932_v48 = vpop.f32.mrb[11].mxu0 }
 0x3df   : > { %642 = vst.msk [vmem:[#allocation4] sm:$0xf] %vm407_vm2, %v640_v47 }
 0x3e6   : > { %v643_v49 = vld [vmem:[#allocation4] sm:$0xf] }
 0x3e7   : > { %938 = vmatmul.mubr.msk.bf16.vlgmr.msra.gmra.mrb[8].mxu1 %vm362_vm1, %v643_v49 }
 0x4ba   : > { %v704_v51 = vpop.f32.mrb[8].mxu1 }
 0x4bb   : > { %v705_v52 = vadd.f32 %v873_v50, %v704_v51  ;;  %v939_v53 = vpop.f32.mrb[9].mxu1 }
 0x4bc   : > { %v707_v54 = vpop.f32.mrb[10].mxu1 }
 0x4bd   : > { %v940_v55 = vpop.f32.mrb[11].mxu1  ;;  %710 = vst.msk [vmem:[%s338_s27] sm:$0xff] %vm362_vm1, %v705_v52 }
 0x4be   : > { %1215 = shalt.err (!%p1212_p8)
}
 0x4bf   : > { %s1216_s1 = scalar_lea.hbm %s1635_s20, 128  ;;  %s1220_s28 = scalar_lea.hbm %s1691_s6, 256 }
 0x4c0   : > { %p1217_p3 = scmp.ne.s32.totalorder %s1635_s20, %s1216_s1  ;;  %p1221_p13 = scmp.lt.u32.totalorder %s1635_s20, %s1691_s6 }
 0x4c1   : > { %p1222_p12 = scmp.lt.u32.totalorder %s1220_s28, %s1216_s1  ;;  %p1224_p2 = scmp.lt.u32.totalorder %s1216_s1, %s1635_s20 }
 0x4c2   : > { %p1218_p11 = pnand %p1217_p3, %p1712_p9 }
 0x4c3   : > { %p1223_p4 = por %p1222_p12, %p1221_p13 }
 0x4c4   : > { %p1219_p6 = pneg %p1218_p11 }
 0x4c5   : > { %p1225_p10 = por %p1224_p2, %p1223_p4 }
 0x4c7   : > { %p1226_p1 = pnand %p1225_p10, %p1219_p6 }
 0x4c9   : > { %1229 = shalt.err (!%p1226_p1)
}
 0x4ca   : > { %959 = dma.vmem_to_hbm [thread:$0]  (%p1712_p9), %s1637_s13, 128, %s1635_s20, %s712_s24  }
 0x4cb PF: > { %s738_s27 = sand.u32 1, %s1272_s21   ;;  %p1713_p0 = scmp.ne.s32.totalorder %s1708_s19, 0 }
 0x4cc   : > { %p1714_p7 = scmp.ge.s32.totalorder %s1292_s26, 2  ;;  %s739_s9 = scalar_lea.sflag [#allocation7], %s738_s27 }
 0x4ce   : > { %p979_p5 = pnand %p1714_p7, %p1713_p0 }
 0x4d0   : > { %1267 = dma.done.wait (!%p979_p5), %s739_s9, 128  }
 0x4d1   : > { %1269 = vsyncadd (!%p979_p5), %s739_s9, 4294967168  ;;  %s24_s26 = sadd.s32 1, %s1292_s26   ;;  %s1715_s21 = smov %s1276_s22 }
 0x4d2   : > { %p21_p8 = scmp.ge.s32.totalorder %s24_s26, 4   ;;  %s1716_s22 = smov %s1280_s23 }
 0x4d3   : > { %s1717_s23 = smov %s1527_s17  ;;  %s1718_s24 = smov %s1288_s25 }
 0x4d4   : > { %s1719_s25 = smov %s1721_s18  ;;  %23 = sbr.rel (!%p21_p8) target bundleno = 10 (0xa), region = 110 }
 0x4db   :  { %744 = vsyncpa [#allocation6], 1 }
 0x4dc   :  { %746 = vsyncpa [#allocation6 + $0x1], 1 }
 0x4dd   :  { %747 = vsyncpa [#allocation9], 1 }
 0x4de   :  { %748 = vsyncpa [#allocation12], 1 }
 0x4df   :  { %749 = vsyncpa [#allocation7], 1 }
 0x4e0   :  { %751 = vsyncpa [#allocation7 + $0x1], 1 }

</bundles_post_ra>
